<compile_context>
chip_gen: v6e
topology: v6e:2x2x1
jax: 0.10.0
libtpu: 0.0.40
codegen_flags: <defaults>
</compile_context>

<pallas_src>
import functools

import jax
import jax.numpy as jnp
import numpy as np
from jax.experimental import pallas as pl
from jax.experimental.pallas import tpu as pltpu


def _double_anchor_infonce_kernel(sk_ref, sk2_ref, im_ref, im_sq_ref, out_ref,
                                  lhs_buf, denom_acc, diag_acc, *,
                                  inv_temp, alpha, mxu_dtype):
    i = pl.program_id(0)            # row tile of sk / sk2 (parallel axis)
    j = pl.program_id(1)            # column tile of im (reduction axis)
    tm = sk_ref.shape[0]

    @pl.when(j == 0)
    def _init():
        denom_acc[...] = jnp.zeros_like(denom_acc)
        diag_acc[...] = jnp.zeros_like(diag_acc)

    sk = sk_ref[...].astype(jnp.float32)      # [tm, D]
    sk2 = sk2_ref[...].astype(jnp.float32)    # [tm, D]
    im = im_ref[...].astype(jnp.float32)      # [tn, D]  (tn == tm)
    im_sq = im_sq_ref[...]                    # [1, tn]  (hoisted to wrapper)

    # Row squared norms in f32 (the row tile is resident across the j sweep).
    sk_sq = jnp.sum(sk * sk, axis=-1, keepdims=True)      # [tm, 1]
    sk2_sq = jnp.sum(sk2 * sk2, axis=-1, keepdims=True)   # [tm, 1]

    # One MXU matmul for both anchors: stack [sk; sk2] into a [2*tm, D] LHS via
    # a VMEM staging buffer and contract last-vs-last against the im tile.
    lhs_buf[pl.ds(0, tm), :] = sk
    lhs_buf[pl.ds(tm, tm), :] = sk2
    g = jax.lax.dot_general(
        lhs_buf[...].astype(mxu_dtype), im.astype(mxu_dtype),
        dimension_numbers=(((1,), (1,)), ((), ())),
        preferred_element_type=jnp.float32)                # [2*tm, tn]

    # TODO(synk): PyTorch's criterion2 runs exp/sum/log in float64; TPU Pallas
    # has no f64 support, so this path is float32.
    d1_sq = jnp.maximum(sk_sq + im_sq - 2.0 * g[:tm], 0.0)
    e = jnp.exp(-jnp.sqrt(d1_sq) * inv_temp)
    d2_sq = jnp.maximum(sk2_sq + im_sq - 2.0 * g[tm:], 0.0)
    e = e + alpha * jnp.exp(-jnp.sqrt(d2_sq) * inv_temp)
    denom_acc[...] += jnp.sum(e, axis=-1, keepdims=True)   # running row sum

    # Positive (diagonal) pairs live in the j == i tile; compute them directly
    # from the aligned rows in full f32 (cheaper and numerically safer than the
    # Gram-matrix form exactly where the distance can be small).
    @pl.when(j == i)
    def _diag():
        r1 = sk - im
        r2 = sk2 - im
        d1 = jnp.sqrt(jnp.sum(r1 * r1, axis=-1, keepdims=True))
        d2 = jnp.sqrt(jnp.sum(r2 * r2, axis=-1, keepdims=True))
        diag_acc[...] = (jnp.exp(-d1 * inv_temp)
                         + alpha * jnp.exp(-d2 * inv_temp))

    @pl.when(j == pl.num_programs(1) - 1)
    def _finalize():
        p = diag_acc[...] / (denom_acc[...] + 1e-10) + 1e-10
        out_ref[...] = -jnp.log(p)


def _choose_tile(batch, dim, budget=24 * 1024 * 1024):
    """Largest square row/col tile that divides the batch, keeps the
    double-buffered working set under a conservative VMEM budget (fits v7x's
    64 MiB with headroom) and keeps every BlockSpec (8, 128)-legal (a multiple
    of 128, or the whole batch)."""
    def footprint(t):
        return (3 * 2 * t * dim * 4      # sk, sk2, im tiles, double-buffered
                + 2 * t * dim * 4        # stacked-LHS staging scratch
                + 6 * t * t * 4)         # gram + exp temporaries
    for t in (512, 256, 128):
        if t < batch and batch % t == 0 and footprint(t) <= budget:
            return t
    if footprint(batch) <= budget or batch % 128 != 0:
        return batch                     # single tile (always BlockSpec-legal)
    # TODO(synk): batches that are multiples of 128 with very large D fall back
    # to tile=128 even if the working set exceeds the soft budget.
    return 128


def double_anchor_infonce(sk, sk2, im, temperature=1.0, alpha=0.0, *,
                          mxu_dtype=jnp.bfloat16, tile=None):
    """JAX/Pallas equivalent of DoubleAnchorInfoNCE.forward (dist_type=0)."""
    assert sk.shape == sk2.shape == im.shape and sk.ndim == 2
    batch, dim = sk.shape
    sk = jnp.asarray(sk, jnp.float32)
    sk2 = jnp.asarray(sk2, jnp.float32)
    im = jnp.asarray(im, jnp.float32)

    if tile is None:
        tile = _choose_tile(batch, dim)
    assert batch % tile == 0
    num_tiles = batch // tile

    # Hoisted column squared norms: computed once here instead of once per
    # (row tile, col tile) grid step inside the kernel.
    im_sq = jnp.sum(im * im, axis=-1)[None, :]             # [1, batch]

    kernel = functools.partial(
        _double_anchor_infonce_kernel,
        inv_temp=1.0 / float(temperature),
        alpha=float(alpha),
        mxu_dtype=mxu_dtype)

    # Explicit scoped-VMEM limit sized to the tile footprint (with headroom),
    # capped at v7x's 64 MiB physical VMEM.
    footprint = (3 * 2 * tile * dim * 4 + 2 * tile * dim * 4
                 + 6 * tile * tile * 4 + 16 * tile * 4)
    vmem_limit = int(min(64 * 1024 * 1024,
                         max(32 * 1024 * 1024, 2 * footprint)))

    cost = pl.CostEstimate(
        flops=4 * batch * batch * dim,
        transcendentals=3 * batch * batch + 4 * batch,
        bytes_accessed=4 * ((2 + num_tiles) * batch * dim + 3 * batch))

    grid_spec = pltpu.PrefetchScalarGridSpec(
        num_scalar_prefetch=0,
        grid=(num_tiles, num_tiles),
        in_specs=[
            pl.BlockSpec((tile, dim), lambda i, j: (i, 0)),   # sk   (row tile)
            pl.BlockSpec((tile, dim), lambda i, j: (i, 0)),   # sk2  (row tile)
            pl.BlockSpec((tile, dim), lambda i, j: (j, 0)),   # im   (col tile)
            pl.BlockSpec((1, tile), lambda i, j: (0, j)),     # ||im||^2
        ],
        out_specs=pl.BlockSpec((tile, 1), lambda i, j: (i, 0)),
        scratch_shapes=[
            pltpu.VMEM((2 * tile, dim), jnp.float32),   # stacked-LHS staging
            pltpu.VMEM((tile, 1), jnp.float32),         # running denominator
            pltpu.VMEM((tile, 1), jnp.float32),         # positive-pair term
        ])

    neg_logp = pl.pallas_call(
        kernel,
        out_shape=jax.ShapeDtypeStruct((batch, 1), jnp.float32),
        grid_spec=grid_spec,
        compiler_params=pltpu.CompilerParams(
            dimension_semantics=("parallel", "arbitrary"),
            vmem_limit_bytes=vmem_limit),
        cost_estimate=cost,
    )(sk, sk2, im, im_sq)

    return jnp.mean(neg_logp)


def _reference_loss_numpy(sk, sk2, im, temperature, alpha):
    """Faithful numpy transcription of the PyTorch forward (dist_type=0)."""
    def make_logits(skx, imx):
        B, D = skx.shape
        n_views = 2
        feats = np.stack([skx, imx], 1).reshape(-1, D)            # [2B, D]
        diff = feats[None, :, :] - feats[:, None, :]
        dist = np.sqrt((diff ** 2).sum(-1))
        distances = -dist / temperature
        masks = (np.eye(B)[None].repeat(n_views, 0)
                 .reshape(n_views, B * B).T
                 .reshape(B, B * n_views).astype(bool))
        masks_exp = np.repeat(masks, n_views, axis=0)
        distances_pos = distances[masks_exp]
        distances_neg = distances[~masks_exp].reshape(n_views * B, -1)
        distances_neg = np.repeat(distances_neg, n_views, axis=0)
        good = ~np.tile(np.eye(n_views).reshape(-1).astype(bool), B)
        distances_neg = distances_neg[:, 1::2]
        logits = np.concatenate([distances_pos[:, None], distances_neg], -1)[good]
        return logits[::2]

    l1 = make_logits(np.asarray(sk, np.float64), np.asarray(im, np.float64))
    l2 = make_logits(np.asarray(sk2, np.float64), np.asarray(im, np.float64))
    e = np.exp(l1) + alpha * np.exp(l2)
    e = e / (e.sum(-1, keepdims=True) + 1e-10)
    return float(-np.log(e[:, 0] + 1e-10).mean())


if __name__ == "__main__":
    k1, k2, k3, k4, k5, k6 = jax.random.split(jax.random.PRNGKey(0), 6)

    # Case 1: small shapes, single-tile grid (1, 1).
    B, D, temperature, alpha = 8, 32, 1.0, 0.5
    sk = jax.random.normal(k1, (B, D), dtype=jnp.float32)
    sk2 = jax.random.normal(k2, (B, D), dtype=jnp.float32)
    im = jax.random.normal(k3, (B, D), dtype=jnp.float32)
    loss = jax.block_until_ready(
        double_anchor_infonce(sk, sk2, im, temperature=temperature, alpha=alpha))
    ref = _reference_loss_numpy(np.asarray(sk), np.asarray(sk2), np.asarray(im),
                                temperature, alpha)
    assert np.allclose(float(loss), ref, rtol=2e-3, atol=2e-3), (float(loss), ref)

    # Case 2: multi-tile grid (2, 2) exercising the pipelined reduction path.
    B, D, temperature, alpha = 256, 64, 2.0, 0.3
    sk = jax.random.normal(k4, (B, D), dtype=jnp.float32)
    sk2 = jax.random.normal(k5, (B, D), dtype=jnp.float32)
    im = jax.random.normal(k6, (B, D), dtype=jnp.float32)
    loss = jax.block_until_ready(
        double_anchor_infonce(sk, sk2, im, temperature=temperature, alpha=alpha))
    ref = _reference_loss_numpy(np.asarray(sk), np.asarray(sk2), np.asarray(im),
                                temperature, alpha)
    assert np.allclose(float(loss), ref, rtol=2e-3, atol=2e-3), (float(loss), ref)

    print("KERNEL_OK")
</pallas_src>

<mosaic_0001>
module attributes {stable_mosaic.version = 11 : i64} {
  func.func @_double_anchor_infonce_kernel(%arg0: i32, %arg1: i32, %arg2: memref<8x32xf32, #tpu.memory_space<vmem>>, %arg3: memref<8x32xf32, #tpu.memory_space<vmem>>, %arg4: memref<8x32xf32, #tpu.memory_space<vmem>>, %arg5: memref<1x8xf32, #tpu.memory_space<vmem>>, %arg6: memref<8x1xf32, #tpu.memory_space<vmem>>, %arg7: memref<16x32xf32, #tpu.memory_space<vmem>>, %arg8: memref<8x1xf32, #tpu.memory_space<vmem>>, %arg9: memref<8x1xf32, #tpu.memory_space<vmem>>) attributes {dimension_semantics = [#tpu.dimension_semantics<parallel>, #tpu.dimension_semantics<arbitrary>], iteration_bounds = array<i64: 1, 1>, scalar_prefetch = 0 : i64, scratch_operands = 3 : i64, tpu.core_type = #tpu.core_type<tc>, window_params = [{transform_indices = @transform_0, window_bounds = array<i64: 8, 32>}, {transform_indices = @transform_1, window_bounds = array<i64: 8, 32>}, {transform_indices = @transform_2, window_bounds = array<i64: 8, 32>}, {transform_indices = @transform_3, window_bounds = array<i64: 1, 8>}, {transform_indices = @transform_4, window_bounds = array<i64: 8, 1>}]} {
    %c0_i32 = arith.constant 0 : i32
    %0 = arith.cmpi eq, %arg1, %c0_i32 : i32
    %1 = arith.extui %0 : i1 to i32
    %c0_i32_0 = arith.constant 0 : i32
    %2 = arith.cmpi ne, %1, %c0_i32_0 : i32
    scf.if %2 {
      %cst_32 = arith.constant 0.000000e+00 : f32
      %63 = vector.broadcast %cst_32 : f32 to vector<8x1xf32>
      %c0_33 = arith.constant 0 : index
      %c0_34 = arith.constant 0 : index
      %64 = vector.load %arg8[%c0_33, %c0_34] : memref<8x1xf32, #tpu.memory_space<vmem>>, vector<8x1xf32>
      tpu.vector_store %arg8[%c0_33, %c0_34], %63 {strides = array<i32>} : memref<8x1xf32, #tpu.memory_space<vmem>>, vector<8x1xf32>,
      %cst_35 = arith.constant 0.000000e+00 : f32
      %65 = vector.broadcast %cst_35 : f32 to vector<8x1xf32>
      %c0_36 = arith.constant 0 : index
      %c0_37 = arith.constant 0 : index
      %66 = vector.load %arg9[%c0_36, %c0_37] : memref<8x1xf32, #tpu.memory_space<vmem>>, vector<8x1xf32>
      tpu.vector_store %arg9[%c0_36, %c0_37], %65 {strides = array<i32>} : memref<8x1xf32, #tpu.memory_space<vmem>>, vector<8x1xf32>,
    } else {
    }
    %c0 = arith.constant 0 : index
    %c0_1 = arith.constant 0 : index
    %3 = vector.load %arg2[%c0, %c0_1] : memref<8x32xf32, #tpu.memory_space<vmem>>, vector<8x32xf32>
    %c0_2 = arith.constant 0 : index
    %c0_3 = arith.constant 0 : index
    %4 = vector.load %arg3[%c0_2, %c0_3] : memref<8x32xf32, #tpu.memory_space<vmem>>, vector<8x32xf32>
    %c0_4 = arith.constant 0 : index
    %c0_5 = arith.constant 0 : index
    %5 = vector.load %arg4[%c0_4, %c0_5] : memref<8x32xf32, #tpu.memory_space<vmem>>, vector<8x32xf32>
    %c0_6 = arith.constant 0 : index
    %c0_7 = arith.constant 0 : index
    %6 = vector.load %arg5[%c0_6, %c0_7] : memref<1x8xf32, #tpu.memory_space<vmem>>, vector<1x8xf32>
    %7 = arith.mulf %3, %3 : vector<8x32xf32>
    %cst = arith.constant dense<0.000000e+00> : vector<8xf32>
    %8 = vector.multi_reduction <add>, %7, %cst [1] : vector<8x32xf32> to vector<8xf32>
    %9 = vector.shape_cast %8 : vector<8xf32> to vector<8x1xf32>
    %10 = arith.mulf %4, %4 : vector<8x32xf32>
    %cst_8 = arith.constant dense<0.000000e+00> : vector<8xf32>
    %11 = vector.multi_reduction <add>, %10, %cst_8 [1] : vector<8x32xf32> to vector<8xf32>
    %12 = vector.shape_cast %11 : vector<8xf32> to vector<8x1xf32>
    %c0_9 = arith.constant 0 : index
    %c0_10 = arith.constant 0 : index
    %13 = vector.load %arg7[%c0_9, %c0_10] : memref<16x32xf32, #tpu.memory_space<vmem>>, vector<8x32xf32>
    tpu.vector_store %arg7[%c0_9, %c0_10], %3 {strides = array<i32>} : memref<16x32xf32, #tpu.memory_space<vmem>>, vector<8x32xf32>,
    %c8 = arith.constant 8 : index
    %c0_11 = arith.constant 0 : index
    %14 = vector.load %arg7[%c8, %c0_11] : memref<16x32xf32, #tpu.memory_space<vmem>>, vector<8x32xf32>
    tpu.vector_store %arg7[%c8, %c0_11], %4 {strides = array<i32>} : memref<16x32xf32, #tpu.memory_space<vmem>>, vector<8x32xf32>,
    %c0_12 = arith.constant 0 : index
    %c0_13 = arith.constant 0 : index
    %15 = vector.load %arg7[%c0_12, %c0_13] : memref<16x32xf32, #tpu.memory_space<vmem>>, vector<16x32xf32>
    %16 = arith.truncf %15 : vector<16x32xf32> to vector<16x32xbf16>
    %17 = arith.truncf %5 : vector<8x32xf32> to vector<8x32xbf16>
    %cst_14 = arith.constant dense<0.000000e+00> : vector<16x8xf32>
    %18 = tpu.matmul %16, %17, %cst_14 {dimension_numbers = #tpu.dot_dimension_numbers<[1], [1], [0], [0], [0, 0, 1, 0], [], []>} : vector<16x32xbf16>, vector<8x32xbf16>, vector<16x8xf32> -> vector<16x8xf32>
    %19 = vector.broadcast %9 : vector<8x1xf32> to vector<8x8xf32>
    %20 = vector.broadcast %6 : vector<1x8xf32> to vector<8x8xf32>
    %21 = arith.addf %19, %20 : vector<8x8xf32>
    %22 = vector.extract_strided_slice %18 {offsets = [0, 0], sizes = [8, 8], strides = [1, 1]} : vector<16x8xf32> to vector<8x8xf32>
    %cst_15 = arith.constant 2.000000e+00 : f32
    %23 = vector.broadcast %cst_15 : f32 to vector<8x8xf32>
    %24 = arith.mulf %23, %22 : vector<8x8xf32>
    %25 = arith.subf %21, %24 : vector<8x8xf32>
    %cst_16 = arith.constant 0.000000e+00 : f32
    %26 = vector.broadcast %cst_16 : f32 to vector<8x8xf32>
    %27 = arith.maximumf %25, %26 : vector<8x8xf32>
    %28 = math.sqrt %27 : vector<8x8xf32>
    %cst_17 = arith.constant 0.000000e+00 : f32
    %29 = vector.broadcast %cst_17 : f32 to vector<8x8xf32>
    %30 = arith.subf %29, %28 : vector<8x8xf32>
    %cst_18 = arith.constant 1.000000e+00 : f32
    %31 = vector.broadcast %cst_18 : f32 to vector<8x8xf32>
    %32 = arith.mulf %30, %31 : vector<8x8xf32>
    %33 = math.exp %32 : vector<8x8xf32>
    %34 = vector.broadcast %12 : vector<8x1xf32> to vector<8x8xf32>
    %35 = vector.broadcast %6 : vector<1x8xf32> to vector<8x8xf32>
    %36 = arith.addf %34, %35 : vector<8x8xf32>
    %37 = vector.extract_strided_slice %18 {offsets = [8, 0], sizes = [8, 8], strides = [1, 1]} : vector<16x8xf32> to vector<8x8xf32>
    %cst_19 = arith.constant 2.000000e+00 : f32
    %38 = vector.broadcast %cst_19 : f32 to vector<8x8xf32>
    %39 = arith.mulf %38, %37 : vector<8x8xf32>
    %40 = arith.subf %36, %39 : vector<8x8xf32>
    %cst_20 = arith.constant 0.000000e+00 : f32
    %41 = vector.broadcast %cst_20 : f32 to vector<8x8xf32>
    %42 = arith.maximumf %40, %41 : vector<8x8xf32>
    %43 = math.sqrt %42 : vector<8x8xf32>
    %cst_21 = arith.constant 0.000000e+00 : f32
    %44 = vector.broadcast %cst_21 : f32 to vector<8x8xf32>
    %45 = arith.subf %44, %43 : vector<8x8xf32>
    %cst_22 = arith.constant 1.000000e+00 : f32
    %46 = vector.broadcast %cst_22 : f32 to vector<8x8xf32>
    %47 = arith.mulf %45, %46 : vector<8x8xf32>
    %48 = math.exp %47 : vector<8x8xf32>
    %cst_23 = arith.constant 5.000000e-01 : f32
    %49 = vector.broadcast %cst_23 : f32 to vector<8x8xf32>
    %50 = arith.mulf %49, %48 : vector<8x8xf32>
    %51 = arith.addf %33, %50 : vector<8x8xf32>
    %c0_24 = arith.constant 0 : index
    %c0_25 = arith.constant 0 : index
    %52 = vector.load %arg8[%c0_24, %c0_25] : memref<8x1xf32, #tpu.memory_space<vmem>>, vector<8x1xf32>
    %cst_26 = arith.constant dense<0.000000e+00> : vector<8xf32>
    %53 = vector.multi_reduction <add>, %51, %cst_26 [1] : vector<8x8xf32> to vector<8xf32>
    %54 = vector.shape_cast %53 : vector<8xf32> to vector<8x1xf32>
    %55 = arith.addf %52, %54 : vector<8x1xf32>
    %c0_27 = arith.constant 0 : index
    %c0_28 = arith.constant 0 : index
    %56 = vector.load %arg8[%c0_27, %c0_28] : memref<8x1xf32, #tpu.memory_space<vmem>>, vector<8x1xf32>
    tpu.vector_store %arg8[%c0_27, %c0_28], %55 {strides = array<i32>} : memref<8x1xf32, #tpu.memory_space<vmem>>, vector<8x1xf32>,
    %57 = arith.cmpi eq, %arg1, %arg0 : i32
    %58 = arith.extui %57 : i1 to i32
    %c0_i32_29 = arith.constant 0 : i32
    %59 = arith.cmpi ne, %58, %c0_i32_29 : i32
    scf.if %59 {
      %63 = arith.subf %3, %5 : vector<8x32xf32>
      %64 = arith.subf %4, %5 : vector<8x32xf32>
      %65 = arith.mulf %63, %63 : vector<8x32xf32>
      %cst_32 = arith.constant dense<0.000000e+00> : vector<8xf32>
      %66 = vector.multi_reduction <add>, %65, %cst_32 [1] : vector<8x32xf32> to vector<8xf32>
      %67 = vector.shape_cast %66 : vector<8xf32> to vector<8x1xf32>
      %68 = math.sqrt %67 : vector<8x1xf32>
      %69 = arith.mulf %64, %64 : vector<8x32xf32>
      %cst_33 = arith.constant dense<0.000000e+00> : vector<8xf32>
      %70 = vector.multi_reduction <add>, %69, %cst_33 [1] : vector<8x32xf32> to vector<8xf32>
      %71 = vector.shape_cast %70 : vector<8xf32> to vector<8x1xf32>
      %72 = math.sqrt %71 : vector<8x1xf32>
      %cst_34 = arith.constant 0.000000e+00 : f32
      %73 = vector.broadcast %cst_34 : f32 to vector<8x1xf32>
      %74 = arith.subf %73, %68 : vector<8x1xf32>
      %cst_35 = arith.constant 1.000000e+00 : f32
      %75 = vector.broadcast %cst_35 : f32 to vector<8x1xf32>
      %76 = arith.mulf %74, %75 : vector<8x1xf32>
      %77 = math.exp %76 : vector<8x1xf32>
      %cst_36 = arith.constant 0.000000e+00 : f32
      %78 = vector.broadcast %cst_36 : f32 to vector<8x1xf32>
      %79 = arith.subf %78, %72 : vector<8x1xf32>
      %cst_37 = arith.constant 1.000000e+00 : f32
      %80 = vector.broadcast %cst_37 : f32 to vector<8x1xf32>
      %81 = arith.mulf %79, %80 : vector<8x1xf32>
      %82 = math.exp %81 : vector<8x1xf32>
      %cst_38 = arith.constant 5.000000e-01 : f32
      %83 = vector.broadcast %cst_38 : f32 to vector<8x1xf32>
      %84 = arith.mulf %83, %82 : vector<8x1xf32>
      %85 = arith.addf %77, %84 : vector<8x1xf32>
      %c0_39 = arith.constant 0 : index
      %c0_40 = arith.constant 0 : index
      %86 = vector.load %arg9[%c0_39, %c0_40] : memref<8x1xf32, #tpu.memory_space<vmem>>, vector<8x1xf32>
      tpu.vector_store %arg9[%c0_39, %c0_40], %85 {strides = array<i32>} : memref<8x1xf32, #tpu.memory_space<vmem>>, vector<8x1xf32>,
    } else {
    }
    %c0_i32_30 = arith.constant 0 : i32
    %60 = arith.cmpi eq, %arg1, %c0_i32_30 : i32
    %61 = arith.extui %60 : i1 to i32
    %c0_i32_31 = arith.constant 0 : i32
    %62 = arith.cmpi ne, %61, %c0_i32_31 : i32
    scf.if %62 {
      %c0_32 = arith.constant 0 : index
      %c0_33 = arith.constant 0 : index
      %63 = vector.load %arg9[%c0_32, %c0_33] : memref<8x1xf32, #tpu.memory_space<vmem>>, vector<8x1xf32>
      %c0_34 = arith.constant 0 : index
      %c0_35 = arith.constant 0 : index
      %64 = vector.load %arg8[%c0_34, %c0_35] : memref<8x1xf32, #tpu.memory_space<vmem>>, vector<8x1xf32>
      %cst_36 = arith.constant 1.000000e-10 : f32
      %65 = vector.broadcast %cst_36 : f32 to vector<8x1xf32>
      %66 = arith.addf %64, %65 : vector<8x1xf32>
      %67 = arith.divf %63, %66 : vector<8x1xf32>
      %cst_37 = arith.constant 1.000000e-10 : f32
      %68 = vector.broadcast %cst_37 : f32 to vector<8x1xf32>
      %69 = arith.addf %67, %68 : vector<8x1xf32>
      %70 = math.log %69 : vector<8x1xf32>
      %cst_38 = arith.constant 0.000000e+00 : f32
      %71 = vector.broadcast %cst_38 : f32 to vector<8x1xf32>
      %72 = arith.subf %71, %70 : vector<8x1xf32>
      %c0_39 = arith.constant 0 : index
      %c0_40 = arith.constant 0 : index
      %73 = vector.load %arg6[%c0_39, %c0_40] : memref<8x1xf32, #tpu.memory_space<vmem>>, vector<8x1xf32>
      tpu.vector_store %arg6[%c0_39, %c0_40], %72 {strides = array<i32>} : memref<8x1xf32, #tpu.memory_space<vmem>>, vector<8x1xf32>,
    } else {
    }
    return
  }
  func.func @transform_0(%arg0: i32, %arg1: i32) -> (i32, i32) {
    %c0_i32 = arith.constant 0 : i32
    %c0_i32_0 = arith.constant 0 : i32
    return %arg0, %c0_i32 : i32, i32
  }
  func.func @transform_1(%arg0: i32, %arg1: i32) -> (i32, i32) {
    %c0_i32 = arith.constant 0 : i32
    %c0_i32_0 = arith.constant 0 : i32
    return %arg0, %c0_i32 : i32, i32
  }
  func.func @transform_2(%arg0: i32, %arg1: i32) -> (i32, i32) {
    %c0_i32 = arith.constant 0 : i32
    %c0_i32_0 = arith.constant 0 : i32
    return %arg1, %c0_i32 : i32, i32
  }
  func.func @transform_3(%arg0: i32, %arg1: i32) -> (i32, i32) {
    %c0_i32 = arith.constant 0 : i32
    %c0_i32_0 = arith.constant 0 : i32
    return %c0_i32, %arg1 : i32, i32
  }
  func.func @transform_4(%arg0: i32, %arg1: i32) -> (i32, i32) {
    %c0_i32 = arith.constant 0 : i32
    %c0_i32_0 = arith.constant 0 : i32
    return %arg0, %c0_i32 : i32, i32
  }
}

</mosaic_0001>

<bundles_post_ra>
// kernel: tpu_custom_call.1
= control target key start
LH: loop header
LB: loop body
LE: loop exit
PB: predicated region body
PF: predicated region fallthrough
CT: control target
= control target key end

     0   :  { %9 = vsyncpa [#allocation6], 0  ;;  %s383_s0 = inlined_call_operand.hbm [shape: f32[8,32], index: 0, kind: input, shape index: {}]   ;;  %s384_s1 = inlined_call_operand.hbm [shape: f32[8,32], index: 1, kind: input, shape index: {}]   ;;  %s385_s2 = inlined_call_operand.hbm [shape: f32[8,32], index: 2, kind: input, shape index: {}]   ;;  %s386_s3 = inlined_call_operand.vmem [shape: f32[1,8], index: 3, kind: input, shape index: {}]   ;;  %s387_s4 = inlined_call_operand.vmem [shape: f32[8,1], index: 4, kind: output, shape index: {}]  }
   0x1   :  { %10 = vsyncpa [#allocation8], 0  ;;  %s325_s15 = smov [#allocation7]   ;;  %s326_s17 = smov [#allocation5]  }
   0x2   :  { %s27_s16 = sshll.u32 %s325_s15, 4  ;;  %s17_s18 = sshll.u32 %s326_s17, 4  ;;  %s28_s16 = int_to_ptr.vmem [resolvable:$true] %s27_s16  ;;  %s18_s18 = int_to_ptr.vmem [resolvable:$true] %s17_s18 }
   0x3   :  { %s269_s19 = scalar_lea.vmem %s28_s16, 128  ;;  %p274_p1 = scmp.lt.s32.totalorder %s28_s16, %s28_s16 }
   0x4   :  { %p270_p0 = scmp.ne.s32.totalorder %s28_s16, %s269_s19  ;;  %p275_p2 = scmp.lt.s32.totalorder %s269_s19, %s269_s19 }
   0x6   :  { %p276_p3 = por %p275_p2, %p274_p1 }
   0x8   :  { %p277_p4 = pnand %p276_p3, %p270_p0 }
   0xa   :  { %280 = shalt.err (!%p277_p4)
}
   0xb   :  { %30 = dma.hbm_to_vmem [thread:$0]  %s384_s1, 128, %s28_s16, [#allocation8]  }
   0xc   :  { %s289_s22 = scalar_lea.vmem %s18_s18, 128  ;;  %p294_p6 = scmp.lt.s32.totalorder %s18_s18, %s18_s18 }
   0xd   :  { %p290_p5 = scmp.ne.s32.totalorder %s18_s18, %s289_s22  ;;  %p295_p7 = scmp.lt.s32.totalorder %s289_s22, %s289_s22 }
   0xf   :  { %p296_p8 = por %p295_p7, %p294_p6 }
  0x11   :  { %p297_p9 = pnand %p296_p8, %p290_p5 }
  0x13   :  { %300 = shalt.err (!%p297_p9)
}
  0x14   :  { %20 = dma.hbm_to_vmem [thread:$0]  %s383_s0, 128, %s18_s18, [#allocation6]  }
  0x15   :  { %s327_s25 = smov [#allocation9]  }
  0x16   :  { %s37_s26 = sshll.u32 %s327_s25, 4  ;;  %s38_s26 = int_to_ptr.vmem [resolvable:$true] %s37_s26 }
  0x17   :  { %s309_s27 = scalar_lea.vmem %s38_s26, 128  ;;  %p314_p11 = scmp.lt.s32.totalorder %s38_s26, %s38_s26 }
  0x18   :  { %p310_p10 = scmp.ne.s32.totalorder %s38_s26, %s309_s27  ;;  %p315_p12 = scmp.lt.s32.totalorder %s309_s27, %s309_s27 }
  0x1a   :  { %p316_p13 = por %p315_p12, %p314_p11 }
  0x1c   :  { %p317_p0 = pnand %p316_p13, %p310_p10 }
  0x1e   :  { %320 = shalt.err (!%p317_p0)
}
  0x1f   :  { %40 = dma.hbm_to_vmem [thread:$0]  %s385_s2, 128, %s38_s26, [#allocation8]  }
  0x20   :  { %321 = dma.done.wait [#allocation6], 128  }
  0x21   :  { %322 = vsyncadd [#allocation6], 4294967168 }
  0x22   :  { %323 = dma.done.wait [#allocation8], 256  }
  0x23   :  { %324 = vsyncadd [#allocation8], 4294967040  ;;  %vm57_vm0 = vcmask 7168   ;;  %v328_v0 = vmov 0.0   ;;  %vm329_vm1 = vmmov 0   ;;  %vm65_vm2 = vcmask 261120  }
  0x24   :  { %58 = vst.msk [vmem:[#allocation3] sm:$0xff] %vm57_vm0, %v328_v0  ;;  %59 = vst.msk [vmem:[#allocation4] sm:$0xff] %vm57_vm0, %v328_v0  ;;  %230 = vmatprep.subr.bf16.mxu0 %v328_v0  ;;  %232 = vmatprep.mubr.msk.bf16.mxu0 %vm329_vm1, %v328_v0  ;;  %v60_v1 = vld [vmem:[#allocation5] sm:$0xff]  ;;  %v61_v2 = vld [vmem:[#allocation7] sm:$0xff]  ;;  %vm163_vm11 = vcmask 64512  }
  0x25   :  { %v62_v3 = vld [vmem:[#allocation9] sm:$0xff]  ;;  %73 = vst.msk [vmem:[#allocation2] sm:$0xff] %vm65_vm2, %v60_v1  ;;  %74 = vst.msk [vmem:[#allocation2 + $0x8] sm:$0xff] %vm65_vm2, %v61_v2  ;;  %v69_v5 = vmul.f32 %v61_v2, %v61_v2  ;;  %v64_v6 = vmul.f32 %v60_v1, %v60_v1  ;;  %v227_v20 = vld [vmem:[%s386_s3] ss:$0 sm:$0xff] }
  0x26   :  { %v78_v4 = vpack.c.bf16 %v62_v3, %v62_v3  ;;  %v175_v13 = vsub.f32 %v61_v2, %v62_v3  ;;  %v174_v16 = vsub.f32 %v60_v1, %v62_v3 }
  0x27   :  { %v70_v8 = vsel %vm65_vm2, %v69_v5, 0.0  ;;  %v66_v9 = vsel %vm65_vm2, %v64_v6, 0.0 }
  0x28   :  { %v83_v7 = vsel %vm65_vm2, %v78_v4, 0  ;;  %71 = vadd.xlane.f32.xlu0 %v70_v8  ;;  %v187_v14 = vmul.f32 %v175_v13, %v175_v13  ;;  %v176_v17 = vmul.f32 %v174_v16, %v174_v16 }
  0x29   :  { %231 = vmatpush3.bf16.xpose.msra.mxu0 %v83_v7 }
  0x2a   :  { %v188_v15 = vsel %vm65_vm2, %v187_v14, 0.0  ;;  %v177_v18 = vsel %vm65_vm2, %v176_v17, 0.0 }
  0x2b   :  { %189 = vadd.xlane.f32.xlu1 %v188_v15 }
  0x2c   :  { %v75_v10 = vld [vmem:[#allocation2] sm:$0xff]  ;;  %v76_v11 = vld [vmem:[#allocation2 + $0x8] sm:$0xff]  ;;  %67 = vadd.xlane.f32.xlu0 %v66_v9  ;;  %v162_v9 = vld [vmem:[#allocation3] sm:$0xff] }
  0x2d   :  { %v77_v12 = vpack.c.bf16 %v76_v11, %v75_v10 }
  0x2f   :  { %178 = vadd.xlane.f32.xlu1 %v177_v18 }
  0x30   :  { %233 = vmatmul.mubr.msk.bf16.vlgmr.msra.gmra.mxu0 %vm65_vm2, %v77_v12 }
  0xb1   :  { %v72_v19 = vpop.xlane.xlu0 %71 }
  0xb2   :  { %v146_v28 = vadd.f32 %v227_v20, %v72_v19 }
  0xb4   :  { %v190_v34 = vpop.xlane.xlu1 %189 }
  0xb5   :  { %v68_v21 = vpop.xlane.xlu0 %67  ;;  %vm193_vm7 = vcmp.eq.f32.partialorder %v190_v34, inf  ;;  %v196_v51 = vand.u32 2147483648, %v190_v34  ;;  %vm195_vm8 = vcmp.eq.f32.partialorder %v190_v34, 0.0 }
  0xb6   :  { %v132_v22 = vadd.f32 %v227_v20, %v68_v21 }
  0xb8   :  { %v179_v39 = vpop.xlane.xlu1 %178 }
  0xb9   :  { %vm182_vm9 = vcmp.eq.f32.partialorder %v179_v39, inf  ;;  %v185_v56 = vand.u32 2147483648, %v179_v39  ;;  %vm184_vm10 = vcmp.eq.f32.partialorder %v179_v39, 0.0 }
  0xf0   :  { %v119_v23 = vpop.f32.mrf.mxu0 }
  0xf1   :  { %v133_v24 = vmul.f32 2.0, %v119_v23 }
  0xf2   :  { %v234_v25 = vpop.f32.mrf.mxu0 }
  0xf3   :  { %v134_v26 = vsub.f32 %v132_v22, %v133_v24 }
  0xf4   :  { %v122_v27 = vpop.f32.mrf.mxu0 }
  0xf5   :  { %v135_v29 = vmax.f32 %v134_v26, 0.0  ;;  %v147_v30 = vmul.f32 2.0, %v122_v27 }
  0xf6   :  { %v235_v31 = vpop.f32.mrf.mxu0 }
  0xf7   :  { %241 = vrsqrt.f32 %v135_v29  ;;  %v148_v32 = vsub.f32 %v146_v28, %v147_v30  ;;  %vm138_vm3 = vcmp.eq.f32.partialorder %v135_v29, inf  ;;  %v141_v37 = vand.u32 2147483648, %v135_v29 }
  0xf8   :  { %vm140_vm4 = vcmp.eq.f32.partialorder %v135_v29, 0.0 }
  0xf9   :  { %v149_v33 = vmax.f32 %v148_v32, 0.0 }
  0xfb   :  { %243 = vrsqrt.f32 %v149_v33  ;;  %vm152_vm5 = vcmp.eq.f32.partialorder %v149_v33, inf  ;;  %v155_v43 = vand.u32 2147483648, %v149_v33  ;;  %vm154_vm6 = vcmp.eq.f32.partialorder %v149_v33, 0.0 }
  0xfc   :  { %245 = vrsqrt.f32 %v190_v34 }
  0xfd   :  { %247 = vrsqrt.f32 %v179_v39 }
 0x104   :  { %v242_v35 = vpop.eup %241 }
 0x105   :  { %v137_v36 = vmul.f32 %v242_v35, %v135_v29 }
 0x107   :  { %v139_v38 = vsel %vm138_vm3, %v135_v29, %v137_v36 }
 0x108   :  { %v244_v40 = vpop.eup %243  ;;  %v142_v41 = vsel %vm140_vm4, %v141_v37, %v139_v38 }
 0x109   :  { %v151_v42 = vmul.f32 %v244_v40, %v149_v33  ;;  %v143_v44 = vsub.f32 0.0, %v142_v41  ;;  %v246_v50 = vpop.eup %245 }
 0x10a   :  { %v192_v52 = vmul.f32 %v246_v50, %v190_v34  ;;  %v248_v54 = vpop.eup %247 }
 0x10b   :  { %v153_v45 = vsel %vm152_vm5, %v149_v33, %v151_v42  ;;  %v144_v48 = vmul.f32 1.442695, %v143_v44  ;;  %v181_v58 = vmul.f32 %v248_v54, %v179_v39 }
 0x10c   :  { %v156_v46 = vsel %vm154_vm6, %v155_v43, %v153_v45  ;;  %v194_v53 = vsel %vm193_vm7, %v190_v34, %v192_v52 }
 0x10d   :  { %v157_v47 = vsub.f32 0.0, %v156_v46  ;;  %v197_v55 = vsel %vm195_vm8, %v196_v51, %v194_v53  ;;  %v183_v60 = vsel %vm182_vm9, %v179_v39, %v181_v58 }
 0x10e   :  { %v201_v57 = vsub.f32 0.0, %v197_v55  ;;  %v186_v61 = vsel %vm184_vm10, %v185_v56, %v183_v60 }
 0x10f   :  { %v158_v49 = vmul.f32 1.442695, %v157_v47  ;;  %v198_v62 = vsub.f32 0.0, %v186_v61 }
 0x110   :  { %v202_v59 = vmul.f32 1.442695, %v201_v57 }
 0x111   :  { %249 = vpow2.f32 %v158_v49  ;;  %v199_v63 = vmul.f32 1.442695, %v198_v62 }
 0x112   :  { %251 = vpow2.f32 %v144_v48 }
 0x113   :  { %253 = vpow2.f32 %v202_v59 }
 0x114   :  { %255 = vpow2.f32 %v199_v63 }
 0x11e   :  { %v250_v0 = vpop.eup %249 }
 0x11f   :  { %v160_v1 = vmul.f32 0.5, %v250_v0  ;;  %v252_v2 = vpop.eup %251 }
 0x120   :  { %v254_v5 = vpop.eup %253 }
 0x121   :  { %v161_v3 = vadd.f32 %v252_v2, %v160_v1  ;;  %v204_v6 = vmul.f32 0.5, %v254_v5  ;;  %v256_v7 = vpop.eup %255 }
 0x123   :  { %v164_v4 = vsel %vm163_vm11, %v161_v3, 0.0  ;;  %v205_v8 = vadd.f32 %v256_v7, %v204_v6 }
 0x124   :  { %165 = vadd.xlane.f32.xlu0 %v164_v4 }
 0x125   :  { %206 = vst.msk [vmem:[#allocation4] sm:$0xff] %vm57_vm0, %v205_v8 }
 0x12c   :  { %v210_v15 = vld [vmem:[#allocation4] sm:$0xff] }
 0x1ad   :  { %v166_v10 = vpop.xlane.xlu0 %165 }
 0x1ae   :  { %v167_v11 = vadd.f32 %v166_v10, %v162_v9 }
 0x1b0   :  { %169 = vst.msk [vmem:[#allocation3] sm:$0xff] %vm57_vm0, %v167_v11 }
 0x1b7   :  { %v211_v12 = vld [vmem:[#allocation3] sm:$0xff] }
 0x1b8   :  { %v212_v13 = vadd.f32 1e-10, %v211_v12 }
 0x1ba   :  { %257 = vrcp.f32 %v212_v13 }
 0x1c7   :  { %v258_v14 = vpop.eup %257 }
 0x1c8   :  { %v214_v16 = vmul.f32 %v258_v14, %v210_v15 }
 0x1ca   :  { %v215_v17 = vadd.f32 1e-10, %v214_v16 }
 0x1cc   :  { %259 = vlog2.f32 %v215_v17 }
 0x1d9   :  { %v260_v18 = vpop.eup %259 }
 0x1da   :  { %v217_v19 = vmul.f32 0.6931472, %v260_v18 }
 0x1dc   :  { %v218_v20 = vsub.f32 0.0, %v217_v19 }
 0x1de   :  { %219 = vst.msk [vmem:[%s387_s4] sm:$0xff] %vm57_vm0, %v218_v20 }
 0x1df   :  { %224 = vsyncpa [#allocation6], 1 }
 0x1e0   :  { %225 = vsyncpa [#allocation8], 1 }

</bundles_post_ra>
